<compile_context>
chip_gen: v6e
topology: v6e:2x2x1
jax: 0.10.0
libtpu: 0.0.40
codegen_flags: <defaults>
</compile_context>

<pallas_src>
import jax
import jax.numpy as jnp
from jax import lax
from jax.experimental import pallas as pl
from jax.experimental.pallas import tpu as pltpu

HIDDEN = 128
LANE = 128


def _regression_kernel(x_ref, w1_ref, b1_ref, w2_ref, sc_ref, o_ref):
    # fc1 on the MXU: h[hid, b] = sum_d W1[hid, d] * x[b, d]  (transposed-rhs matmul, no
    # explicit x transpose), accumulated in f32.
    h = lax.dot_general(
        w1_ref[...], x_ref[...],
        dimension_numbers=(((1,), (1,)), ((), ())),
        preferred_element_type=jnp.float32)                   # (HIDDEN, tile) f32
    h = jnp.maximum(h + b1_ref[...], 0.0)                     # bias + ReLU
    # TODO(synk): training-mode dropout (p=0.5) not implemented; eval-mode forward only.
    # fc2 (128 -> 1): VPU multiply + sublane (XLU) reduce -> lane-dense (1, tile).
    y = jnp.sum(h * w2_ref[...], axis=0, keepdims=True)       # (1, tile)
    y = y + sc_ref[0]                                         # b2        (SMEM scalar)
    o_ref[...] = jnp.clip(y, 0.0, sc_ref[1])                  # clamp_max (SMEM scalar)


def _round_up(n, m):
    return ((n + m - 1) // m) * m


def _vmem_capacity_bytes():
    try:
        return int(pltpu.get_tpu_info().vmem_capacity_bytes)
    except Exception:
        return 64 << 20          # conservative fallback (v7x physical VMEM)


def regression_branch(x, w1, b1, w2, b2, substance, *,
                      compute_dtype=jnp.bfloat16,
                      target_x_bytes=4 << 20,
                      max_tile_rows=16384):
    """x: (B, D).  Torch-layout params: w1 (128, D), b1 (128,), w2 (1, 128), b2 (1,)."""
    B, D = x.shape
    clamp_max = 150.0 if substance == "glucose" else 100.0
    itemsize = jnp.dtype(compute_dtype).itemsize

    # ---- VMEM budget (generation aware) & batch-tile sizing ----------------------------
    vmem_limit = int(min(_vmem_capacity_bytes() // 2, 64 << 20))
    # Per-row VMEM need: x tile (2 bufs) + (1, tile) out (sublane-padded to 8, 2 bufs)
    # + (HIDDEN, tile) f32 intermediates (budget ~3 live copies, generous).
    per_row = 2 * D * itemsize + 2 * 8 * 4 + 3 * HIDDEN * 4
    fixed = (2 * HIDDEN * D * itemsize          # resident W1 (double-buffered, real itemsize)
             + 2 * 2 * HIDDEN * LANE * 4        # b1 / w2 columns (lane-padded to 128)
             + (4 << 20))                       # headroom
    max_rows = max(LANE,
                   (max(vmem_limit - fixed, 1 << 20) // per_row) // LANE * LANE)
    # HBM bytes-per-step target for the streamed x (amortizes the ~0.35 us/step overhead).
    target_rows = max(LANE,
                      min(max_tile_rows, target_x_bytes // (D * itemsize)) // LANE * LANE)
    # Keep >= 2 grid steps when the batch allows it (v7x has two TensorCores).
    cap_b = _round_up(pl.cdiv(B, 2), LANE) if B >= 2 * LANE else _round_up(B, LANE)
    tile = max(LANE, min(target_rows, max_rows, cap_b))
    num_tiles = pl.cdiv(B, tile)                # partial edge block; no jnp.pad of x

    # ---- operand prep -------------------------------------------------------------------
    x = x.astype(compute_dtype)
    w1_hd = w1.astype(compute_dtype)                        # (128, D), VMEM-resident
    b1_col = b1.reshape(HIDDEN, 1).astype(jnp.float32)
    w2_col = w2.reshape(HIDDEN, 1).astype(jnp.float32)
    scalars = jnp.concatenate(
        [b2.reshape(1).astype(jnp.float32),
         jnp.array([clamp_max], jnp.float32)])              # SMEM: [b2, clamp_max]

    out = pl.pallas_call(
        _regression_kernel,
        out_shape=jax.ShapeDtypeStruct((num_tiles, tile), jnp.float32),
        grid_spec=pltpu.PrefetchScalarGridSpec(
            num_scalar_prefetch=0,
            grid=(num_tiles,),
            in_specs=[
                pl.BlockSpec((tile, D), lambda i: (i, 0)),          # x tile (streamed)
                pl.BlockSpec((HIDDEN, D), lambda i: (0, 0)),        # W1      (resident)
                pl.BlockSpec((HIDDEN, 1), lambda i: (0, 0)),        # b1 col  (resident)
                pl.BlockSpec((HIDDEN, 1), lambda i: (0, 0)),        # w2 col  (resident)
                pl.BlockSpec(memory_space=pltpu.MemorySpace.SMEM),  # [b2, clamp_max]
            ],
            out_specs=pl.BlockSpec((1, tile), lambda i: (i, 0)),    # lane-dense rows
        ),
        compiler_params=pltpu.CompilerParams(
            # TODO(synk): on v7x, pltpu.CORE_PARALLEL on this axis would pin 2-TC sharding.
            dimension_semantics=("parallel",),
            vmem_limit_bytes=vmem_limit,
        ),
    )(x, w1_hd, b1_col, w2_col, scalars)
    return out.reshape(-1)[:B].reshape(B, 1)


def _kaiming_normal(key, fan_out, fan_in):
    # PyTorch kaiming_normal_ with nonlinearity='relu', mode='fan_in':
    # std = sqrt(2 / fan_in), weight shape (fan_out, fan_in).
    std = jnp.sqrt(2.0 / fan_in)
    return std * jax.random.normal(key, (fan_out, fan_in), dtype=jnp.float32)


def init_params(key, input_dim):
    k1, k2, k3, k4 = jax.random.split(key, 4)
    w1 = _kaiming_normal(k1, HIDDEN, input_dim)             # (128, D) torch layout
    w2 = _kaiming_normal(k2, 1, HIDDEN)                     # (1, 128)
    # nn.Linear default bias init: U(-1/sqrt(fan_in), 1/sqrt(fan_in))
    b1 = jax.random.uniform(k3, (HIDDEN,), jnp.float32,
                            -1.0 / jnp.sqrt(input_dim), 1.0 / jnp.sqrt(input_dim))
    b2 = jax.random.uniform(k4, (1,), jnp.float32,
                            -1.0 / jnp.sqrt(HIDDEN), 1.0 / jnp.sqrt(HIDDEN))
    return w1, b1, w2, b2


def reference(x, w1, b1, w2, b2, substance):
    h = jnp.maximum(x @ w1.T + b1, 0.0)
    y = h @ w2.T + b2
    hi = 150.0 if substance == "glucose" else 100.0
    return jnp.clip(y, 0.0, hi)


if __name__ == "__main__":
    key = jax.random.PRNGKey(0)
    kx, kp, kx2 = jax.random.split(key, 3)

    D = 32
    w1, b1, w2, b2 = init_params(kp, D)

    # Small batch (8, 32): single (partial) block, f32 path, glucose clamp.
    x_small = jax.random.normal(kx, (8, D), dtype=jnp.float32)
    out_small = jax.block_until_ready(
        regression_branch(x_small, w1, b1, w2, b2, substance="glucose",
                          compute_dtype=jnp.float32))
    ref_small = reference(x_small, w1, b1, w2, b2, "glucose")
    assert out_small.shape == (8, 1)
    assert jnp.allclose(out_small, ref_small, atol=1e-3, rtol=1e-3)

    # Larger batch: 2-step grid with a partial edge block (no jnp.pad), default bf16
    # streaming path, and the non-glucose clamp (runtime SMEM scalar).
    x_big = jax.random.normal(kx2, (1000, D), dtype=jnp.float32)
    out_big = jax.block_until_ready(
        regression_branch(x_big, w1, b1, w2, b2, substance="lactate"))
    ref_big = reference(x_big.astype(jnp.bfloat16).astype(jnp.float32),
                        w1.astype(jnp.bfloat16).astype(jnp.float32),
                        b1, w2, b2, "lactate")
    assert out_big.shape == (1000, 1)
    assert jnp.allclose(out_big, ref_big, atol=5e-2, rtol=5e-2)

    print("KERNEL_OK")
</pallas_src>

<mosaic_0001>
module attributes {stable_mosaic.version = 11 : i64} {
  func.func @_regression_kernel(%arg0: i32, %arg1: memref<128x32xf32, #tpu.memory_space<vmem>>, %arg2: memref<128x32xf32, #tpu.memory_space<vmem>>, %arg3: memref<128x1xf32, #tpu.memory_space<vmem>>, %arg4: memref<128x1xf32, #tpu.memory_space<vmem>>, %arg5: memref<2xf32, #tpu.memory_space<smem>>, %arg6: memref<1x128xf32, #tpu.memory_space<vmem>>) attributes {dimension_semantics = [#tpu.dimension_semantics<parallel>], iteration_bounds = array<i64: 1>, scalar_prefetch = 0 : i64, scratch_operands = 0 : i64, tpu.core_type = #tpu.core_type<tc>, window_params = [{transform_indices = @transform_0, window_bounds = array<i64: 128, 32>}, {pipeline_mode = #tpu.pipeline_mode<synchronous>, transform_indices = @transform_1, window_bounds = array<i64: 128, 32>}, {pipeline_mode = #tpu.pipeline_mode<synchronous>, transform_indices = @transform_2, window_bounds = array<i64: 128, 1>}, {pipeline_mode = #tpu.pipeline_mode<synchronous>, transform_indices = @transform_3, window_bounds = array<i64: 128, 1>}, {transform_indices = @transform_4, window_bounds = array<i64: 2>}, {transform_indices = @transform_5, window_bounds = array<i64: 1, 128>}]} {
    %c0 = arith.constant 0 : index
    %c0_0 = arith.constant 0 : index
    %0 = vector.load %arg2[%c0, %c0_0] : memref<128x32xf32, #tpu.memory_space<vmem>>, vector<128x32xf32>
    %c0_1 = arith.constant 0 : index
    %c0_2 = arith.constant 0 : index
    %1 = vector.load %arg1[%c0_1, %c0_2] : memref<128x32xf32, #tpu.memory_space<vmem>>, vector<128x32xf32>
    %cst = arith.constant dense<0.000000e+00> : vector<128x128xf32>
    %2 = tpu.matmul %0, %1, %cst {dimension_numbers = #tpu.dot_dimension_numbers<[1], [1], [0], [0], [0, 0, 1, 0], [], []>} : vector<128x32xf32>, vector<128x32xf32>, vector<128x128xf32> -> vector<128x128xf32>
    %c0_3 = arith.constant 0 : index
    %c0_4 = arith.constant 0 : index
    %3 = vector.load %arg3[%c0_3, %c0_4] : memref<128x1xf32, #tpu.memory_space<vmem>>, vector<128x1xf32>
    %4 = vector.broadcast %3 : vector<128x1xf32> to vector<128x128xf32>
    %5 = arith.addf %2, %4 : vector<128x128xf32>
    %cst_5 = arith.constant 0.000000e+00 : f32
    %6 = vector.broadcast %cst_5 : f32 to vector<128x128xf32>
    %7 = arith.maximumf %5, %6 : vector<128x128xf32>
    %c0_6 = arith.constant 0 : index
    %c0_7 = arith.constant 0 : index
    %8 = vector.load %arg4[%c0_6, %c0_7] : memref<128x1xf32, #tpu.memory_space<vmem>>, vector<128x1xf32>
    %9 = vector.broadcast %8 : vector<128x1xf32> to vector<128x128xf32>
    %10 = arith.mulf %7, %9 : vector<128x128xf32>
    %cst_8 = arith.constant dense<0.000000e+00> : vector<128xf32>
    %11 = vector.multi_reduction <add>, %10, %cst_8 [0] : vector<128x128xf32> to vector<128xf32>
    %12 = vector.shape_cast %11 : vector<128xf32> to vector<1x128xf32>
    %c0_9 = arith.constant 0 : index
    %13 = memref.load %arg5[%c0_9] : memref<2xf32, #tpu.memory_space<smem>>
    %14 = vector.broadcast %13 : f32 to vector<1x128xf32>
    %15 = arith.addf %12, %14 : vector<1x128xf32>
    %c1 = arith.constant 1 : index
    %16 = memref.load %arg5[%c1] : memref<2xf32, #tpu.memory_space<smem>>
    %cst_10 = arith.constant 0.000000e+00 : f32
    %17 = vector.broadcast %cst_10 : f32 to vector<1x128xf32>
    %18 = arith.maximumf %17, %15 : vector<1x128xf32>
    %19 = vector.broadcast %16 : f32 to vector<1x128xf32>
    %20 = arith.minimumf %19, %18 : vector<1x128xf32>
    %c0_11 = arith.constant 0 : index
    %c0_12 = arith.constant 0 : index
    %21 = vector.load %arg6[%c0_11, %c0_12] : memref<1x128xf32, #tpu.memory_space<vmem>>, vector<1x128xf32>
    tpu.vector_store %arg6[%c0_11, %c0_12], %20 {strides = array<i32>} : memref<1x128xf32, #tpu.memory_space<vmem>>, vector<1x128xf32>,
    return
  }
  func.func @transform_0(%arg0: i32) -> (i32, i32) {
    %c0_i32 = arith.constant 0 : i32
    %c0_i32_0 = arith.constant 0 : i32
    return %arg0, %c0_i32 : i32, i32
  }
  func.func @transform_1(%arg0: i32) -> (i32, i32) {
    %c0_i32 = arith.constant 0 : i32
    %c0_i32_0 = arith.constant 0 : i32
    %c0_i32_1 = arith.constant 0 : i32
    return %c0_i32, %c0_i32_0 : i32, i32
  }
  func.func @transform_2(%arg0: i32) -> (i32, i32) {
    %c0_i32 = arith.constant 0 : i32
    %c0_i32_0 = arith.constant 0 : i32
    %c0_i32_1 = arith.constant 0 : i32
    return %c0_i32, %c0_i32_0 : i32, i32
  }
  func.func @transform_3(%arg0: i32) -> (i32, i32) {
    %c0_i32 = arith.constant 0 : i32
    %c0_i32_0 = arith.constant 0 : i32
    %c0_i32_1 = arith.constant 0 : i32
    return %c0_i32, %c0_i32_0 : i32, i32
  }
  func.func @transform_4(%arg0: i32) -> i32 {
    %c0_i32 = arith.constant 0 : i32
    %c0_i32_0 = arith.constant 0 : i32
    return %c0_i32 : i32
  }
  func.func @transform_5(%arg0: i32) -> (i32, i32) {
    %c0_i32 = arith.constant 0 : i32
    %c0_i32_0 = arith.constant 0 : i32
    return %arg0, %c0_i32 : i32, i32
  }
}

</mosaic_0001>

<bundles_post_ra>
// kernel: tpu_custom_call.1
= control target key start
LH: loop header
LB: loop body
LE: loop exit
PB: predicated region body
PF: predicated region fallthrough
CT: control target
= control target key end

     0   :  { %10 = vsyncpa [#allocation4], 0  ;;  %s1081_s0 = inlined_call_operand.vmem [shape: f32[8,32], index: 0, kind: input, shape index: {}]   ;;  %s1082_s1 = inlined_call_operand.vmem [shape: f32[128,32], index: 1, kind: input, shape index: {}]   ;;  %s1083_s2 = inlined_call_operand.vmem [shape: f32[128,1], index: 2, kind: input, shape index: {}]   ;;  %s1084_s3 = inlined_call_operand.vmem [shape: f32[128,1], index: 3, kind: input, shape index: {}]   ;;  %s1085_s4 = inlined_call_operand.vmem [shape: f32[2], index: 4, kind: input, shape index: {}]   ;;  %s1086_s5 = inlined_call_operand.hbm [shape: f32[1,128], index: 5, kind: output, shape index: {}]  }
   0x1   :  { %11 = vsyncpa [#allocation3], 0  ;;  %s26_s20 = sshll.u32 %s1085_s4, 4  ;;  %s27_s20 = int_to_ptr.vmem [resolvable:$true] %s26_s20 }
   0x2   :  { %s734_s21 = scalar_lea.vmem %s27_s20, 16  ;;  %p739_p1 = scmp.lt.s32.totalorder %s27_s20, %s27_s20 }
   0x3   :  { %p735_p0 = scmp.ne.s32.totalorder %s27_s20, %s734_s21  ;;  %p740_p2 = scmp.lt.s32.totalorder %s734_s21, %s734_s21 }
   0x5   :  { %p741_p3 = por %p740_p2, %p739_p1 }
   0x7   :  { %p742_p4 = pnand %p741_p3, %p735_p0 }
   0x9   :  { %745 = shalt.err (!%p742_p4)
}
   0xa   :  { %s770_s22 = smov [#allocation2]  }
   0xb   :  { %29 = dma.vmem_to_smem %s27_s20, 16, %s770_s22, [#allocation4]  }
   0xc   :  { %766 = dma.done.wait [#allocation4], 16  }
   0xd   :  { %767 = vsyncadd [#allocation4], 4294967280 }
   0xe   :  { %33 = sfence }
   0xf   :  { %v65_v0 = vld [vmem:[%s1081_s0 + $0x78] sm:$0xff]  ;;  %vm162_vm0 = vcmask 261120   ;;  %v64_v1 = vld [vmem:[%s1081_s0 + $0x70] sm:$0xff]  ;;  %v63_v2 = vld [vmem:[%s1081_s0 + $0x68] sm:$0xff]  ;;  %v771_v3 = vmov 0   ;;  %s772_s17 = smov [#allocation5]  }
  0x10   :  { %641 = vmatprep.subr.msk.mxu0 %vm162_vm0, %v65_v0  ;;  %697 = vmatprep.subr.msk.mxu1 %vm162_vm0, %v65_v0  ;;  %v66_v4 = vld [vmem:[%s1083_s2] sm:$0xff]  ;;  %v68_v5 = vld [vmem:[%s1083_s2 + $0x10] sm:$0xff]  ;;  %v67_v6 = vld [vmem:[%s1083_s2 + $0x8] sm:$0xff]  ;;  %s567_s18 = sshll.u32 %s772_s17, 4  ;;  %s568_s18 = int_to_ptr.vmem [resolvable:$true] %s567_s18 }
  0x11   :  { %642 = vmatpush3.xpose.msk.msra.mxu0 %vm162_vm0, %v65_v0  ;;  %713 = vmatpush3.xpose.msk.msra.mxu1 %vm162_vm0, %v65_v0  ;;  %v69_v7 = vld [vmem:[%s1083_s2 + $0x18] sm:$0xff]  ;;  %v62_v8 = vld [vmem:[%s1081_s0 + $0x60] sm:$0xff]  ;;  %v421_v12 = vld [vmem:[%s1084_s3 + $0x8] sm:$0xff]  ;;  %s746_s19 = scalar_lea.vmem %s568_s18, 16  ;;  %s750_s20 = scalar_lea.vmem %s568_s18, 32 }
  0x12   :  { %643 = vmatprep.subr.msk.mxu0 %vm162_vm0, %v64_v1  ;;  %698 = vmatprep.subr.msk.mxu1 %vm162_vm0, %v64_v1  ;;  %v34_v9 = vld [vmem:[%s1082_s1] sm:$0xff]  ;;  %v61_v13 = vld [vmem:[%s1081_s0 + $0x58] sm:$0xff]  ;;  %v422_v15 = vld [vmem:[%s1084_s3 + $0x10] sm:$0xff]  ;;  %p747_p5 = scmp.ne.s32.totalorder %s568_s18, %s746_s19  ;;  %p751_p6 = scmp.lt.s32.totalorder %s568_s18, %s568_s18 }
  0x13   :  { %732 = vset.pattern.permute.xlu0 %v771_v3  ;;  %733 = vset.pattern.permute.xlu1 %v771_v3  ;;  %v42_v10 = vld [vmem:[%s1082_s1 + $0x40] sm:$0xff]  ;;  %v60_v16 = vld [vmem:[%s1081_s0 + $0x50] sm:$0xff]  ;;  %v71_v17 = vld [vmem:[%s1083_s2 + $0x28] sm:$0xff]  ;;  %p752_p7 = scmp.lt.s32.totalorder %s750_s20, %s746_s19 }
  0x14   :  { %84 = vperm.xlu0 %732, %v66_v4   ;;  %94 = vperm.xlu1 %733, %v68_v5   ;;  %v420_v11 = vld [vmem:[%s1084_s3] sm:$0xff]  ;;  %v423_v18 = vld [vmem:[%s1084_s3 + $0x18] sm:$0xff]  ;;  %v59_v19 = vld [vmem:[%s1081_s0 + $0x48] sm:$0xff] }
  0x15   :  { %644 = vmatpush3.xpose.msk.msra.mxu0 %vm162_vm0, %v64_v1  ;;  %714 = vmatpush3.xpose.msk.msra.mxu1 %vm162_vm0, %v64_v1  ;;  %v70_v14 = vld [vmem:[%s1083_s2 + $0x20] sm:$0xff]  ;;  %v72_v20 = vld [vmem:[%s1083_s2 + $0x30] sm:$0xff]  ;;  %v73_v23 = vld [vmem:[%s1083_s2 + $0x38] sm:$0xff]  ;;  %p753_p8 = por %p752_p7, %p751_p6 }
  0x16   :  { %645 = vmatprep.subr.msk.mxu0 %vm162_vm0, %v63_v2  ;;  %699 = vmatprep.subr.msk.mxu1 %vm162_vm0, %v63_v2  ;;  %v424_v21 = vld [vmem:[%s1084_s3 + $0x20] sm:$0xff]  ;;  %v425_v24 = vld [vmem:[%s1084_s3 + $0x28] sm:$0xff]  ;;  %v57_v25 = vld [vmem:[%s1081_s0 + $0x38] sm:$0xff] }
  0x17   :  { %673 = vmatprep.mubr.msk.f32.mxu0 %vm162_vm0, %v34_v9  ;;  %685 = vmatprep.mubr.msk.f32.mxu1 %vm162_vm0, %v42_v10  ;;  %v58_v22 = vld [vmem:[%s1081_s0 + $0x40] sm:$0xff]  ;;  %v426_v27 = vld [vmem:[%s1084_s3 + $0x30] sm:$0xff]  ;;  %v75_v29 = vld [vmem:[%s1083_s2 + $0x48] sm:$0xff]  ;;  %p754_p9 = pnand %p753_p8, %p747_p5 }
  0x18   :  { %89 = vperm.xlu0 %732, %v67_v6   ;;  %99 = vperm.xlu1 %733, %v69_v7   ;;  %v74_v26 = vld [vmem:[%s1083_s2 + $0x40] sm:$0xff]  ;;  %v56_v28 = vld [vmem:[%s1081_s0 + $0x30] sm:$0xff]  ;;  %v427_v30 = vld [vmem:[%s1084_s3 + $0x38] sm:$0xff] }
  0x19   :  { %646 = vmatpush3.xpose.msk.msra.mxu0 %vm162_vm0, %v63_v2  ;;  %715 = vmatpush3.xpose.msk.msra.mxu1 %vm162_vm0, %v63_v2  ;;  %v55_v31 = vld [vmem:[%s1081_s0 + $0x28] sm:$0xff]  ;;  %v76_v32 = vld [vmem:[%s1083_s2 + $0x50] sm:$0xff]  ;;  %v428_v33 = vld [vmem:[%s1084_s3 + $0x40] sm:$0xff] }
  0x1a   :  { %647 = vmatprep.subr.msk.mxu0 %vm162_vm0, %v62_v8  ;;  %700 = vmatprep.subr.msk.mxu1 %vm162_vm0, %v62_v8  ;;  %v54_v34 = vld [vmem:[%s1081_s0 + $0x20] sm:$0xff]  ;;  %v77_v35 = vld [vmem:[%s1083_s2 + $0x58] sm:$0xff]  ;;  %v429_v36 = vld [vmem:[%s1084_s3 + $0x48] sm:$0xff] }
  0x1b   :  { %v53_v37 = vld [vmem:[%s1081_s0 + $0x18] sm:$0xff]  ;;  %v78_v38 = vld [vmem:[%s1083_s2 + $0x60] sm:$0xff]  ;;  %v430_v39 = vld [vmem:[%s1084_s3 + $0x50] sm:$0xff] }
  0x1c   :  { %438 = vperm.xlu0 %732, %v420_v11   ;;  %443 = vperm.xlu1 %733, %v421_v12   ;;  %v52_v40 = vld [vmem:[%s1081_s0 + $0x10] sm:$0xff]  ;;  %v79_v41 = vld [vmem:[%s1083_s2 + $0x68] sm:$0xff]  ;;  %v431_v42 = vld [vmem:[%s1084_s3 + $0x58] sm:$0xff] }
  0x1d   :  { %648 = vmatpush3.xpose.msk.msra.mxu0 %vm162_vm0, %v62_v8  ;;  %716 = vmatpush3.xpose.msk.msra.mxu1 %vm162_vm0, %v62_v8  ;;  %v51_v43 = vld [vmem:[%s1081_s0 + $0x8] sm:$0xff]  ;;  %v80_v44 = vld [vmem:[%s1083_s2 + $0x70] sm:$0xff]  ;;  %v432_v45 = vld [vmem:[%s1084_s3 + $0x60] sm:$0xff] }
  0x1e   :  { %649 = vmatprep.subr.msk.mxu0 %vm162_vm0, %v61_v13  ;;  %701 = vmatprep.subr.msk.mxu1 %vm162_vm0, %v61_v13  ;;  %v50_v46 = vld [vmem:[%s1081_s0] sm:$0xff]  ;;  %v81_v47 = vld [vmem:[%s1083_s2 + $0x78] sm:$0xff]  ;;  %v433_v48 = vld [vmem:[%s1084_s3 + $0x68] sm:$0xff]  ;;  %s608_s2 = sld [smem:[#allocation2 + $0x1]] }
  0x1f   :  { %v35_v49 = vld [vmem:[%s1082_s1 + $0x8] sm:$0xff]  ;;  %v36_v51 = vld [vmem:[%s1082_s1 + $0x10] sm:$0xff]  ;;  %v435_v54 = vld [vmem:[%s1084_s3 + $0x78] sm:$0xff] }
  0x20   :  { %104 = vperm.xlu0 %732, %v70_v14   ;;  %448 = vperm.xlu1 %733, %v422_v15   ;;  %v43_v50 = vld [vmem:[%s1082_s1 + $0x48] sm:$0xff]  ;;  %v44_v52 = vld [vmem:[%s1082_s1 + $0x50] sm:$0xff]  ;;  %v37_v55 = vld [vmem:[%s1082_s1 + $0x18] sm:$0xff] }
  0x21   :  { %650 = vmatpush3.xpose.msk.msra.mxu0 %vm162_vm0, %v61_v13  ;;  %717 = vmatpush3.xpose.msk.msra.mxu1 %vm162_vm0, %v61_v13  ;;  %v434_v53 = vld [vmem:[%s1084_s3 + $0x70] sm:$0xff]  ;;  %v45_v56 = vld [vmem:[%s1082_s1 + $0x58] sm:$0xff]  ;;  %v38_v57 = vld [vmem:[%s1082_s1 + $0x20] sm:$0xff] }
  0x22   :  { %651 = vmatprep.subr.msk.mxu0 %vm162_vm0, %v60_v16  ;;  %702 = vmatprep.subr.msk.mxu1 %vm162_vm0, %v60_v16  ;;  %v46_v58 = vld [vmem:[%s1082_s1 + $0x60] sm:$0xff]  ;;  %v39_v59 = vld [vmem:[%s1082_s1 + $0x28] sm:$0xff]  ;;  %v40_v61 = vld [vmem:[%s1082_s1 + $0x30] sm:$0xff] }
  0x23   :  { %v47_v60 = vld [vmem:[%s1082_s1 + $0x68] sm:$0xff]  ;;  %v48_v62 = vld [vmem:[%s1082_s1 + $0x70] sm:$0xff]  ;;  %v41_v63 = vld [vmem:[%s1082_s1 + $0x38] sm:$0xff] }
  0x24   :  { %109 = vperm.xlu0 %732, %v71_v17   ;;  %453 = vperm.xlu1 %733, %v423_v18   ;;  %v49_v0 = vld [vmem:[%s1082_s1 + $0x78] sm:$0xff]  ;;  %s553_s1 = sld [smem:[#allocation2]] }
  0x25   :  { %652 = vmatpush3.xpose.msk.msra.mxu0 %vm162_vm0, %v60_v16  ;;  %718 = vmatpush3.xpose.msk.msra.mxu1 %vm162_vm0, %v60_v16 }
  0x26   :  { %653 = vmatprep.subr.msk.mxu0 %vm162_vm0, %v59_v19  ;;  %703 = vmatprep.subr.msk.mxu1 %vm162_vm0, %v59_v19 }
  0x28   :  { %114 = vperm.xlu0 %732, %v72_v20   ;;  %458 = vperm.xlu1 %733, %v424_v21  }
  0x29   :  { %654 = vmatpush3.xpose.msk.msra.mxu0 %vm162_vm0, %v59_v19  ;;  %719 = vmatpush3.xpose.msk.msra.mxu1 %vm162_vm0, %v59_v19 }
  0x2a   :  { %655 = vmatprep.subr.msk.mxu0 %vm162_vm0, %v58_v22  ;;  %704 = vmatprep.subr.msk.mxu1 %vm162_vm0, %v58_v22 }
  0x2c   :  { %119 = vperm.xlu0 %732, %v73_v23   ;;  %463 = vperm.xlu1 %733, %v425_v24  }
  0x2d   :  { %656 = vmatpush3.xpose.msk.msra.mxu0 %vm162_vm0, %v58_v22  ;;  %720 = vmatpush3.xpose.msk.msra.mxu1 %vm162_vm0, %v58_v22 }
  0x2e   :  { %657 = vmatprep.subr.msk.mxu0 %vm162_vm0, %v57_v25  ;;  %705 = vmatprep.subr.msk.mxu1 %vm162_vm0, %v57_v25 }
  0x30   :  { %124 = vperm.xlu0 %732, %v74_v26   ;;  %468 = vperm.xlu1 %733, %v426_v27  }
  0x31   :  { %658 = vmatpush3.xpose.msk.msra.mxu0 %vm162_vm0, %v57_v25  ;;  %721 = vmatpush3.xpose.msk.msra.mxu1 %vm162_vm0, %v57_v25 }
  0x32   :  { %659 = vmatprep.subr.msk.mxu0 %vm162_vm0, %v56_v28  ;;  %706 = vmatprep.subr.msk.mxu1 %vm162_vm0, %v56_v28 }
  0x34   :  { %129 = vperm.xlu0 %732, %v75_v29   ;;  %473 = vperm.xlu1 %733, %v427_v30  }
  0x35   :  { %660 = vmatpush3.xpose.msk.msra.mxu0 %vm162_vm0, %v56_v28  ;;  %722 = vmatpush3.xpose.msk.msra.mxu1 %vm162_vm0, %v56_v28 }
  0x36   :  { %661 = vmatprep.subr.msk.mxu0 %vm162_vm0, %v55_v31  ;;  %707 = vmatprep.subr.msk.mxu1 %vm162_vm0, %v55_v31 }
  0x38   :  { %134 = vperm.xlu0 %732, %v76_v32   ;;  %478 = vperm.xlu1 %733, %v428_v33  }
  0x39   :  { %662 = vmatpush3.xpose.msk.msra.mxu0 %vm162_vm0, %v55_v31  ;;  %723 = vmatpush3.xpose.msk.msra.mxu1 %vm162_vm0, %v55_v31 }
  0x3a   :  { %663 = vmatprep.subr.msk.mxu0 %vm162_vm0, %v54_v34  ;;  %708 = vmatprep.subr.msk.mxu1 %vm162_vm0, %v54_v34 }
  0x3c   :  { %139 = vperm.xlu0 %732, %v77_v35   ;;  %483 = vperm.xlu1 %733, %v429_v36  }
  0x3d   :  { %664 = vmatpush3.xpose.msk.msra.mxu0 %vm162_vm0, %v54_v34  ;;  %724 = vmatpush3.xpose.msk.msra.mxu1 %vm162_vm0, %v54_v34 }
  0x3e   :  { %665 = vmatprep.subr.msk.mxu0 %vm162_vm0, %v53_v37  ;;  %709 = vmatprep.subr.msk.mxu1 %vm162_vm0, %v53_v37 }
  0x40   :  { %144 = vperm.xlu0 %732, %v78_v38   ;;  %488 = vperm.xlu1 %733, %v430_v39  }
  0x41   :  { %666 = vmatpush3.xpose.msk.msra.mxu0 %vm162_vm0, %v53_v37  ;;  %725 = vmatpush3.xpose.msk.msra.mxu1 %vm162_vm0, %v53_v37 }
  0x42   :  { %667 = vmatprep.subr.msk.mxu0 %vm162_vm0, %v52_v40  ;;  %710 = vmatprep.subr.msk.mxu1 %vm162_vm0, %v52_v40 }
  0x44   :  { %149 = vperm.xlu0 %732, %v79_v41   ;;  %493 = vperm.xlu1 %733, %v431_v42  }
  0x45   :  { %668 = vmatpush3.xpose.msk.msra.mxu0 %vm162_vm0, %v52_v40  ;;  %726 = vmatpush3.xpose.msk.msra.mxu1 %vm162_vm0, %v52_v40 }
  0x46   :  { %669 = vmatprep.subr.msk.mxu0 %vm162_vm0, %v51_v43  ;;  %711 = vmatprep.subr.msk.mxu1 %vm162_vm0, %v51_v43 }
  0x48   :  { %154 = vperm.xlu0 %732, %v80_v44   ;;  %498 = vperm.xlu1 %733, %v432_v45  }
  0x49   :  { %670 = vmatpush3.xpose.msk.msra.mxu0 %vm162_vm0, %v51_v43  ;;  %727 = vmatpush3.xpose.msk.msra.mxu1 %vm162_vm0, %v51_v43 }
  0x4a   :  { %671 = vmatprep.subr.msk.mxu0 %vm162_vm0, %v50_v46  ;;  %712 = vmatprep.subr.msk.mxu1 %vm162_vm0, %v50_v46 }
  0x4c   :  { %159 = vperm.xlu0 %732, %v81_v47   ;;  %503 = vperm.xlu1 %733, %v433_v48  }
  0x4d   :  { %672 = vmatpush3.xpose.msk.msra.mxu0 %vm162_vm0, %v50_v46  ;;  %728 = vmatpush3.xpose.msk.msra.mxu1 %vm162_vm0, %v50_v46 }
  0x50   :  { %674 = vmatmul.mubr.msk.f32.vlgmr.msra.gmra.mxu0 %vm162_vm0, %v35_v49  ;;  %686 = vmatmul.mubr.msk.f32.vlgmr.msra.gmra.mxu1 %vm162_vm0, %v43_v50 }
  0x51   :  { %676 = vmatprep.mubr.msk.f32.mxu0 %vm162_vm0, %v36_v51  ;;  %688 = vmatprep.mubr.msk.f32.mxu1 %vm162_vm0, %v44_v52 }
  0x52   :  { %508 = vperm.xlu0 %732, %v434_v53   ;;  %513 = vperm.xlu1 %733, %v435_v54  }
  0x54   :  { %677 = vmatmul.mubr.msk.f32.gmra.mxu0 %vm162_vm0, %v37_v55  ;;  %689 = vmatmul.mubr.msk.f32.gmra.mxu1 %vm162_vm0, %v45_v56 }
  0x55   :  { %679 = vmatprep.mubr.msk.f32.mxu0 %vm162_vm0, %v38_v57  ;;  %691 = vmatprep.mubr.msk.f32.mxu1 %vm162_vm0, %v46_v58 }
  0x58   :  { %680 = vmatmul.mubr.msk.f32.gmra.mxu0 %vm162_vm0, %v39_v59  ;;  %692 = vmatmul.mubr.msk.f32.gmra.mxu1 %vm162_vm0, %v47_v60 }
  0x59   :  { %682 = vmatprep.mubr.msk.f32.mxu0 %vm162_vm0, %v40_v61  ;;  %694 = vmatprep.mubr.msk.f32.mxu1 %vm162_vm0, %v48_v62 }
  0x5c   :  { %683 = vmatmul.mubr.msk.f32.gmra.mxu0 %vm162_vm0, %v41_v63  ;;  %695 = vmatmul.mubr.msk.f32.gmra.mxu1 %vm162_vm0, %v49_v0 }
  0x8f   :  { %v85_v1 = vpop.permute.xlu0 %84  ;;  %v95_v2 = vpop.permute.xlu1 %94 }
  0x93   :  { %v90_v3 = vpop.permute.xlu0 %89  ;;  %v100_v4 = vpop.permute.xlu1 %99 }
  0x97   :  { %v439_v5 = vpop.permute.xlu0 %438  ;;  %v444_v6 = vpop.permute.xlu1 %443 }
  0x9b   :  { %v105_v7 = vpop.permute.xlu0 %104  ;;  %v449_v8 = vpop.permute.xlu1 %448 }
  0x9f   :  { %v110_v9 = vpop.permute.xlu0 %109  ;;  %v454_v10 = vpop.permute.xlu1 %453 }
  0xa3   :  { %v115_v11 = vpop.permute.xlu0 %114  ;;  %v459_v12 = vpop.permute.xlu1 %458 }
  0xa7   :  { %v120_v13 = vpop.permute.xlu0 %119  ;;  %v464_v14 = vpop.permute.xlu1 %463 }
  0xab   :  { %v125_v15 = vpop.permute.xlu0 %124  ;;  %v469_v16 = vpop.permute.xlu1 %468 }
  0xaf   :  { %v130_v17 = vpop.permute.xlu0 %129  ;;  %v474_v18 = vpop.permute.xlu1 %473 }
  0xb3   :  { %v135_v19 = vpop.permute.xlu0 %134  ;;  %v479_v20 = vpop.permute.xlu1 %478 }
  0xb7   :  { %v140_v26 = vpop.permute.xlu0 %139  ;;  %v484_v30 = vpop.permute.xlu1 %483 }
  0xbb   :  { %v145_v43 = vpop.permute.xlu0 %144  ;;  %v489_v45 = vpop.permute.xlu1 %488 }
  0xbf   :  { %v150_v61 = vpop.permute.xlu0 %149 }
 0x110   :  { %v675_v21 = vpop.f32.mrf.mxu0  ;;  %v687_v22 = vpop.f32.mrf.mxu1 }
 0x111   :  { %v331_v23 = vadd.f32 %v675_v21, %v90_v3  ;;  %v371_v62 = vadd.f32 %v687_v22, %v130_v17 }
 0x112   :  { %v325_v24 = vpop.f32.mrf.mxu0  ;;  %v365_v25 = vpop.f32.mrf.mxu1 }
 0x113   :  { %v326_v27 = vadd.f32 %v325_v24, %v85_v1  ;;  %v405_v31 = vmax.f32 %v331_v23, 0.0  ;;  %v366_v57 = vadd.f32 %v365_v25, %v125_v15 }
 0x114   :  { %v678_v28 = vpop.f32.mrf.mxu0  ;;  %v690_v29 = vpop.f32.mrf.mxu1 }
 0x115   :  { %v404_v32 = vmax.f32 %v326_v27, 0.0  ;;  %v341_v33 = vadd.f32 %v678_v28, %v100_v4  ;;  %v517_v40 = vmul.f32 %v444_v6, %v405_v31  ;;  %v494_v4 = vpop.permute.xlu1 %493 }
 0x116   :  { %v335_v34 = vpop.f32.mrf.mxu0  ;;  %v375_v38 = vpop.f32.mrf.mxu1 }
 0x117   :  { %v516_v35 = vmul.f32 %v439_v5, %v404_v32  ;;  %v336_v36 = vadd.f32 %v335_v34, %v95_v2  ;;  %v407_v37 = vmax.f32 %v341_v33, 0.0  ;;  %v412_v5 = vmax.f32 %v366_v57, 0.0 }
 0x118   :  { %v681_v39 = vpop.f32.mrf.mxu0  ;;  %v693_v50 = vpop.f32.mrf.mxu1  ;;  %v376_v6 = vadd.f32 %v375_v38, %v135_v19 }
 0x119   :  { %v406_v41 = vmax.f32 %v336_v36, 0.0  ;;  %v351_v42 = vadd.f32 %v681_v39, %v110_v9  ;;  %v532_v46 = vadd.f32 %v517_v40, %v516_v35  ;;  %v519_v49 = vmul.f32 %v454_v10, %v407_v37  ;;  %v499_v22 = vpop.permute.xlu1 %498 }
 0x11a   :  { %v345_v44 = vpop.f32.mrf.mxu0  ;;  %v385_v63 = vpop.f32.mrf.mxu1  ;;  %v413_v10 = vmax.f32 %v371_v62, 0.0  ;;  %v524_v23 = vmul.f32 %v479_v20, %v412_v5  ;;  %v391_v28 = vadd.f32 %v693_v50, %v150_v61 }
 0x11b   :  { %v518_v47 = vmul.f32 %v449_v8, %v406_v41  ;;  %v346_v48 = vadd.f32 %v345_v44, %v105_v7  ;;  %v409_v53 = vmax.f32 %v351_v42, 0.0  ;;  %v386_v24 = vadd.f32 %v385_v63, %v145_v43 }
 0x11c   :  { %v684_v51 = vpop.f32.mrf.mxu0  ;;  %v696_v9 = vpop.f32.mrf.mxu1  ;;  %v525_v25 = vmul.f32 %v484_v30, %v413_v10 }
 0x11d   :  { %v533_v52 = vadd.f32 %v532_v46, %v518_v47  ;;  %v408_v54 = vmax.f32 %v346_v48, 0.0  ;;  %v361_v55 = vadd.f32 %v684_v51, %v120_v13  ;;  %v521_v0 = vmul.f32 %v464_v14, %v409_v53  ;;  %v504_v36 = vpop.permute.xlu1 %503 }
 0x11e   :  { %v355_v56 = vpop.f32.mrf.mxu0  ;;  %v381_v13 = vadd.f32 %v690_v29, %v140_v26  ;;  %v395_v14 = vpop.f32.mrf.mxu1  ;;  %v416_v19 = vmax.f32 %v386_v24, 0.0  ;;  %v417_v26 = vmax.f32 %v391_v28, 0.0  ;;  %v554_v53 = vstv %s553_s1 }
 0x11f   :  { %v520_v58 = vmul.f32 %v459_v12, %v408_v54  ;;  %v534_v59 = vadd.f32 %v533_v52, %v519_v49  ;;  %v356_v60 = vadd.f32 %v355_v56, %v115_v11  ;;  %v411_v2 = vmax.f32 %v361_v55, 0.0  ;;  %v155_v12 = vpop.permute.xlu0 %154 }
 0x120   :  { %v414_v11 = vmax.f32 %v376_v6, 0.0  ;;  %v415_v27 = vmax.f32 %v381_v13, 0.0  ;;  %v396_v33 = vadd.f32 %v395_v14, %v155_v12  ;;  %v528_v20 = vmul.f32 %v499_v22, %v416_v19 }
 0x121   :  { %v535_v1 = vadd.f32 %v534_v59, %v520_v58  ;;  %v410_v3 = vmax.f32 %v356_v60, 0.0  ;;  %v523_v21 = vmul.f32 %v474_v18, %v411_v2  ;;  %v529_v39 = vmul.f32 %v504_v36, %v417_v26  ;;  %v514_v44 = vpop.permute.xlu1 %513 }
 0x122   :  { %v526_v32 = vmul.f32 %v489_v45, %v414_v11  ;;  %v527_v35 = vmul.f32 %v494_v4, %v415_v27  ;;  %v418_v37 = vmax.f32 %v396_v33, 0.0  ;;  %v558_v56 = vstv %s608_s2 }
 0x123   :  { %v522_v7 = vmul.f32 %v469_v16, %v410_v3  ;;  %v536_v8 = vadd.f32 %v535_v1, %v521_v0  ;;  %v160_v34 = vpop.permute.xlu0 %159 }
 0x124   :  { %v401_v18 = vadd.f32 %v696_v9, %v160_v34 }
 0x125   :  { %v537_v15 = vadd.f32 %v536_v8, %v522_v7 }
 0x126   :  { %v419_v40 = vmax.f32 %v401_v18, 0.0 }
 0x127   :  { %v538_v17 = vadd.f32 %v537_v15, %v523_v21  ;;  %v509_v30 = vpop.permute.xlu0 %508 }
 0x128   :  { %v530_v42 = vmul.f32 %v509_v30, %v418_v37  ;;  %v531_v45 = vmul.f32 %v514_v44, %v419_v40 }
 0x129   :  { %v539_v31 = vadd.f32 %v538_v17, %v524_v23 }
 0x12b   :  { %v540_v16 = vadd.f32 %v539_v31, %v525_v25 }
 0x12d   :  { %v541_v29 = vadd.f32 %v540_v16, %v526_v32 }
 0x12f   :  { %v542_v38 = vadd.f32 %v541_v29, %v527_v35 }
 0x131   :  { %v543_v41 = vadd.f32 %v542_v38, %v528_v20 }
 0x133   :  { %v544_v43 = vadd.f32 %v543_v41, %v529_v39 }
 0x135   :  { %v545_v46 = vadd.f32 %v544_v43, %v530_v42 }
 0x137   :  { %v546_v47 = vadd.f32 %v545_v46, %v531_v45 }
 0x139   :  { %v547_v48 = vrot.slane %v546_v47, 4 }
 0x13b   :  { %v548_v49 = vadd.f32 %v547_v48, %v546_v47 }
 0x13d   :  { %v549_v50 = vrot.slane %v548_v49, 2 }
 0x13f   :  { %v550_v51 = vadd.f32 %v549_v50, %v548_v49 }
 0x141   :  { %v551_v52 = vrot.slane %v550_v51, 1 }
 0x143   :  { %v552_v54 = vadd.f32 %v551_v52, %v550_v51 }
 0x145   :  { %v555_v55 = vadd.f32 %v554_v53, %v552_v54 }
 0x147   :  { %v557_v57 = vmax.f32 %v555_v55, 0.0 }
 0x149   :  { %v559_v58 = vmin.f32 %v558_v56, %v557_v57 }
 0x14b   :  { %560 = vst [vmem:[#allocation5] sm:$0x1] %v559_v58 }
 0x14c   :  { %757 = shalt.err (!%p754_p9)
}
 0x14d   :  { %570 = dma.vmem_to_hbm [thread:$0]  %s568_s18, 16, %s1086_s5, [#allocation3]  }
 0x14e   :  { %768 = dma.done.wait [#allocation3], 16  }
 0x14f   :  { %769 = vsyncadd [#allocation3], 4294967280 }
 0x150   :  { %574 = vsyncpa [#allocation3], 1 }
 0x151   :  { %575 = vsyncpa [#allocation4], 1 }

</bundles_post_ra>
